<compile_context>
chip_gen: v7x
topology: tpu7x:2x2x1
jax: 0.10.0
libtpu: 0.0.40
codegen_flags: <defaults>
</compile_context>

<pallas_src>
import dataclasses
import math

import jax
import jax.numpy as jnp
from jax.experimental import pallas as pl
from jax.experimental.pallas import tpu as pltpu


def _round_up(x, m):
    return (x + m - 1) // m * m


def _cdiv(a, b):
    return -(-a // b)


# ---------------------------------------------------------------------------
# Prepared (setup-time) parameters
# ---------------------------------------------------------------------------

@dataclasses.dataclass(frozen=True)
class TimestepEmbedderParams:
    """Padded weights + static metadata. Build ONCE at module setup.

    Not a pytree — close over it inside jit (arrays become captured constants).
    """
    freqs: jax.Array   # (1, half) f32
    w1: jax.Array      # (freq_size, hidden_p)
    b1: jax.Array      # (1, hidden_p)
    w2: jax.Array      # (hidden_p, hidden_p)
    b2: jax.Array      # (1, hidden_p)
    half: int
    freq_size: int
    hidden: int
    hidden_p: int
    tk: int            # K-tile of the second matmul
    grid_k: int        # number of K tiles (1 => fully resident w2)
    max_period: int


def prepare_timestep_embedder_params(w1, b1, w2, b2, *,
                                     frequency_embedding_size=256,
                                     max_period=10000,
                                     w2_block_bytes=8 << 20):
    """Pad/split weights once (hoisted out of the per-call path)."""
    # TODO(synk): odd frequency_embedding_size (the zero-pad branch of the
    # PyTorch reference) is not supported by this kernel.
    assert frequency_embedding_size % 2 == 0, "even frequency_embedding_size only"
    half = frequency_embedding_size // 2
    hidden = w1.shape[1]
    assert w1.shape == (frequency_embedding_size, hidden)
    assert w2.shape == (hidden, hidden)
    assert b1.shape == (hidden,) and b2.shape == (hidden,)

    wbytes = jnp.dtype(w1.dtype).itemsize
    hidden_p0 = _round_up(hidden, 128)

    # Decide K-tiling of the second matmul so one (tk, hidden_p) w2 slab stays
    # under w2_block_bytes.  hidden_p is re-padded so tk * grid_k == hidden_p.
    grid_k = max(1, _cdiv(hidden_p0 * hidden_p0 * wbytes, w2_block_bytes))
    tk = _round_up(_cdiv(hidden_p0, grid_k), 128)
    hidden_p = tk * grid_k
    ph = hidden_p - hidden

    # Zero padding keeps padded channels exactly zero through
    # Linear -> SiLU -> Linear (SiLU(0)=0, padded w2 rows/cols are zero).
    w1p = jnp.pad(w1, ((0, 0), (0, ph)))
    w2p = jnp.pad(w2, ((0, ph), (0, ph)))
    b1p = jnp.pad(b1.reshape(1, hidden), ((0, 0), (0, ph)))
    b2p = jnp.pad(b2.reshape(1, hidden), ((0, 0), (0, ph)))
    freqs = jnp.exp(
        -math.log(max_period) * jnp.arange(half, dtype=jnp.float32) / half
    ).reshape(1, half)

    return TimestepEmbedderParams(
        freqs=freqs, w1=w1p, b1=b1p, w2=w2p, b2=b2p,
        half=half, freq_size=frequency_embedding_size,
        hidden=hidden, hidden_p=hidden_p, tk=tk, grid_k=grid_k,
        max_period=max_period)


# ---------------------------------------------------------------------------
# Kernels
# ---------------------------------------------------------------------------

def _embed_and_layer1(t_ref, freqs_ref, w1_ref, b1_ref):
    """Sinusoidal embedding -> Linear -> SiLU for one batch tile (f32 acts)."""
    args = t_ref[...] * freqs_ref[...]                     # (TILE_N, half) f32
    wt = w1_ref.dtype
    # [cos | sin] concat is lane-tile aligned when half % 128 == 0 (the common
    # freq_size=256 case): a single K = 2*half dot fills the 256-deep MXU.
    emb = jnp.concatenate([jnp.cos(args), jnp.sin(args)], axis=-1).astype(wt)
    h = jnp.dot(emb, w1_ref[...], preferred_element_type=jnp.float32)
    h = h + b1_ref[...].astype(jnp.float32)
    return h * jax.lax.logistic(h)                         # SiLU (EUP logistic)


def _kernel_single(t_ref, freqs_ref, w1_ref, b1_ref, w2_ref, b2_ref, out_ref):
    """Small w2: fully resident, one dot per batch tile."""
    h = _embed_and_layer1(t_ref, freqs_ref, w1_ref, b1_ref)
    out = jnp.dot(h.astype(w2_ref.dtype), w2_ref[...],
                  preferred_element_type=jnp.float32)
    out_ref[...] = (out + b2_ref[...].astype(jnp.float32)).astype(out_ref.dtype)


def _kernel_ktiled(t_ref, freqs_ref, w1_ref, b1_ref, w2_ref, b2_ref, out_ref,
                   h_sc, acc_sc):
    """Large w2: stream (tk, hidden_p) slabs over a K grid axis, f32 acc."""
    k = pl.program_id(1)
    tk = w2_ref.shape[0]

    @pl.when(k == 0)
    def _():
        h_sc[...] = _embed_and_layer1(t_ref, freqs_ref, w1_ref, b1_ref)
        acc_sc[...] = jnp.zeros_like(acc_sc)

    off = pl.multiple_of(k * tk, 128)
    h_chunk = h_sc[:, pl.ds(off, tk)]
    acc_sc[...] += jnp.dot(h_chunk.astype(w2_ref.dtype), w2_ref[...],
                           preferred_element_type=jnp.float32)

    @pl.when(k == pl.num_programs(1) - 1)
    def _():
        out_ref[...] = (acc_sc[...] +
                        b2_ref[...].astype(jnp.float32)).astype(out_ref.dtype)


# ---------------------------------------------------------------------------
# References / fallbacks
# ---------------------------------------------------------------------------

def _timestep_embedder_ref(t, w1, b1, w2, b2, frequency_embedding_size=256,
                           max_period=10000):
    """Pure-JAX reference mirroring the PyTorch forward pass (f32 math)."""
    half = frequency_embedding_size // 2
    freqs = jnp.exp(
        -math.log(max_period) * jnp.arange(half, dtype=jnp.float32) / half)
    args = t.astype(jnp.float32)[:, None] * freqs[None]
    emb = jnp.concatenate([jnp.cos(args), jnp.sin(args)], axis=-1)
    h = emb @ w1.astype(jnp.float32) + b1.astype(jnp.float32)
    h = jax.nn.silu(h)
    return h @ w2.astype(jnp.float32) + b2.astype(jnp.float32)


def _ref_from_params(t, p: TimestepEmbedderParams):
    """XLA fallback for tiny batches, using the prepared (padded) params."""
    args = t.astype(jnp.float32)[:, None] * p.freqs
    emb = jnp.concatenate([jnp.cos(args), jnp.sin(args)], axis=-1)
    h = emb @ p.w1.astype(jnp.float32) + p.b1.astype(jnp.float32)
    h = h * jax.lax.logistic(h)
    out = h @ p.w2.astype(jnp.float32) + p.b2.astype(jnp.float32)
    return out[:, :p.hidden].astype(p.w1.dtype)


# ---------------------------------------------------------------------------
# Wrapper
# ---------------------------------------------------------------------------

def timestep_embedder(t, params: TimestepEmbedderParams, *,
                      tile_n=256, min_batch_for_pallas=32):
    """JAX/Pallas equivalent of TimestepEmbedder.forward.

    t: (N,) float array of (possibly fractional) timesteps.
    params: output of prepare_timestep_embedder_params (built once at setup).
    Output dtype follows the parameter dtype; accumulation is always f32.
    """
    p = params
    n = t.shape[0]
    out_dtype = p.w1.dtype

    # Tiny batches: per-call launch + weight-DMA overhead dominates; an 8-row
    # LHS fills 1/16 of the MXU sublanes. Let XLA fuse it instead.
    if n < min_batch_for_pallas:
        return _ref_from_params(t, p)

    half, freq_size = p.half, p.freq_size
    hidden, hidden_p = p.hidden, p.hidden_p
    tk, grid_k = p.tk, p.grid_k

    # Batch tiling: sublane multiple for the output dtype, and keep grid_n >= 2
    # so dimension_semantics=("parallel",...) can shard the batch across v7x's
    # two TensorCores.
    sub = 16 if jnp.dtype(out_dtype).itemsize == 2 else 8
    tile_n = _round_up(max(tile_n, sub), sub)
    tile_n_eff = min(tile_n, _round_up(n, sub))
    if n >= 2 * sub:
        tile_n_eff = min(tile_n_eff, _round_up((n + 1) // 2, sub))
    n_p = _round_up(n, tile_n_eff)
    grid_n = n_p // tile_n_eff

    t2d = jnp.pad(t.astype(jnp.float32), (0, n_p - n)).reshape(n_p, 1)

    # VMEM estimate: weights/biases/freqs single-buffered (Buffered(1)),
    # t/out tiles double-buffered, w2 slabs double-buffered when K-tiled.
    wbytes = jnp.dtype(p.w1.dtype).itemsize
    obytes = jnp.dtype(out_dtype).itemsize
    bbytes = jnp.dtype(p.b1.dtype).itemsize
    resident = p.w1.size * wbytes + (p.b1.size + p.b2.size) * bbytes + p.freqs.size * 4
    streamed = 2 * tile_n_eff * 4 + 2 * tile_n_eff * hidden_p * obytes
    scratch = 0
    if grid_k == 1:
        resident += p.w2.size * wbytes
    else:
        streamed += 2 * tk * hidden_p * wbytes
        scratch = 2 * tile_n_eff * hidden_p * 4
    est_vmem = resident + streamed + scratch

    # Always set the VMEM limit (v5e's scoped default is ~16 MiB) but cap well
    # below physical VMEM (v7x: 64 MiB/TC) to leave Mosaic scratch headroom.
    try:
        cap = int(pltpu.get_tpu_info().vmem_capacity_bytes)
    except Exception:
        cap = 64 << 20
    cap = max(16 << 20, min(cap - (8 << 20), 56 << 20))
    vmem_limit = int(min(cap, max(32 << 20, est_vmem + (8 << 20))))

    const = lambda *_: (0, 0)
    buf1 = pl.Buffered(1)   # constant block index => single-buffer resident

    if grid_k == 1:
        grid = (grid_n,)
        in_specs = [
            pl.BlockSpec((tile_n_eff, 1), lambda i: (i, 0)),                       # t tile
            pl.BlockSpec((1, half), const, pipeline_mode=buf1),                    # freqs
            pl.BlockSpec((freq_size, hidden_p), const, pipeline_mode=buf1),        # w1
            pl.BlockSpec((1, hidden_p), const, pipeline_mode=buf1),                # b1
            pl.BlockSpec((hidden_p, hidden_p), const, pipeline_mode=buf1),         # w2
            pl.BlockSpec((1, hidden_p), const, pipeline_mode=buf1),                # b2
        ]
        out_spec = pl.BlockSpec((tile_n_eff, hidden_p), lambda i: (i, 0))
        kernel = _kernel_single
        scratch_shapes = []
        dims = ("parallel",)
    else:
        grid = (grid_n, grid_k)
        in_specs = [
            pl.BlockSpec((tile_n_eff, 1), lambda i, k: (i, 0)),                    # t tile
            pl.BlockSpec((1, half), const, pipeline_mode=buf1),                    # freqs
            pl.BlockSpec((freq_size, hidden_p), const, pipeline_mode=buf1),        # w1
            pl.BlockSpec((1, hidden_p), const, pipeline_mode=buf1),                # b1
            pl.BlockSpec((tk, hidden_p), lambda i, k: (k, 0)),                     # w2 slab
            pl.BlockSpec((1, hidden_p), const, pipeline_mode=buf1),                # b2
        ]
        out_spec = pl.BlockSpec((tile_n_eff, hidden_p), lambda i, k: (i, 0))
        kernel = _kernel_ktiled
        scratch_shapes = [pltpu.VMEM((tile_n_eff, hidden_p), jnp.float32),
                          pltpu.VMEM((tile_n_eff, hidden_p), jnp.float32)]
        dims = ("parallel", "arbitrary")

    out_p = pl.pallas_call(
        kernel,
        out_shape=jax.ShapeDtypeStruct((n_p, hidden_p), out_dtype),
        grid=grid,
        in_specs=in_specs,
        out_specs=out_spec,
        scratch_shapes=scratch_shapes,
        compiler_params=pltpu.CompilerParams(
            dimension_semantics=dims, vmem_limit_bytes=vmem_limit),
    )(t2d, p.freqs, p.w1, p.b1, p.w2, p.b2)

    return out_p[:n, :hidden]


def timestep_embedder_from_weights(t, w1, b1, w2, b2, *,
                                   frequency_embedding_size=256,
                                   max_period=10000, **kwargs):
    """Convenience wrapper. Prefer preparing params once at setup (avoids a
    per-call weight pad/copy)."""
    p = prepare_timestep_embedder_params(
        w1, b1, w2, b2, frequency_embedding_size=frequency_embedding_size,
        max_period=max_period)
    return timestep_embedder(t, p, **kwargs)


# ---------------------------------------------------------------------------
# Demo / self-test
# ---------------------------------------------------------------------------

if __name__ == "__main__":
    key = jax.random.PRNGKey(0)
    k_t, k_w1, k_b1, k_w2, k_b2 = jax.random.split(key, 5)

    batch = 64          # >= min_batch_for_pallas so the Pallas path runs
    freq_size = 256
    hidden = 32

    t = jax.random.uniform(k_t, (batch,), jnp.float32) * 1000.0
    w1 = jax.random.normal(k_w1, (freq_size, hidden), jnp.float32) * 0.02
    b1 = jax.random.normal(k_b1, (hidden,), jnp.float32) * 0.02
    w2 = jax.random.normal(k_w2, (hidden, hidden), jnp.float32) * 0.02
    b2 = jax.random.normal(k_b2, (hidden,), jnp.float32) * 0.02

    ref = _timestep_embedder_ref(t, w1, b1, w2, b2,
                                 frequency_embedding_size=freq_size)

    # f32-parameter path (default nn.Linear dtype); params prepared once.
    params = prepare_timestep_embedder_params(
        w1, b1, w2, b2, frequency_embedding_size=freq_size)
    out = jax.block_until_ready(timestep_embedder(t, params))
    assert out.shape == (batch, hidden) and out.dtype == jnp.float32
    assert jnp.allclose(out, ref, atol=2e-3, rtol=2e-3), "f32 mismatch vs reference"

    # bf16-parameter path (half the weight DMA, bf16 MXU, f32 accumulation).
    w1b, b1b = w1.astype(jnp.bfloat16), b1.astype(jnp.bfloat16)
    w2b, b2b = w2.astype(jnp.bfloat16), b2.astype(jnp.bfloat16)
    params_bf = prepare_timestep_embedder_params(
        w1b, b1b, w2b, b2b, frequency_embedding_size=freq_size)
    out_bf = jax.block_until_ready(timestep_embedder(t, params_bf))
    ref_bf = _timestep_embedder_ref(t, w1b, b1b, w2b, b2b,
                                    frequency_embedding_size=freq_size)
    assert out_bf.shape == (batch, hidden) and out_bf.dtype == jnp.bfloat16
    assert jnp.allclose(out_bf.astype(jnp.float32), ref_bf,
                        atol=2e-2, rtol=2e-2), "bf16 mismatch vs reference"

    # K-tiled second-matmul path (forced small w2 slab budget for coverage).
    params_kt = prepare_timestep_embedder_params(
        w1, b1, w2, b2, frequency_embedding_size=freq_size,
        w2_block_bytes=32 * 1024)
    assert params_kt.grid_k > 1
    out_kt = jax.block_until_ready(timestep_embedder(t, params_kt))
    assert jnp.allclose(out_kt, ref, atol=2e-3, rtol=2e-3), "K-tiled mismatch"

    # Tiny-batch fallback (below min_batch_for_pallas -> fused XLA path).
    t_small = t[:8]
    out_small = jax.block_until_ready(timestep_embedder(t_small, params))
    ref_small = _timestep_embedder_ref(t_small, w1, b1, w2, b2,
                                       frequency_embedding_size=freq_size)
    assert out_small.shape == (8, hidden)
    assert jnp.allclose(out_small, ref_small, atol=2e-3, rtol=2e-3)

    print("KERNEL_OK")
</pallas_src>

<mosaic_0001>
module attributes {stable_mosaic.version = 11 : i64} {
  func.func @_kernel_single(%arg0: i32, %arg1: memref<32x1xf32, #tpu.memory_space<vmem>>, %arg2: memref<1x128xf32, #tpu.memory_space<vmem>>, %arg3: memref<256x128xf32, #tpu.memory_space<vmem>>, %arg4: memref<1x128xf32, #tpu.memory_space<vmem>>, %arg5: memref<128x128xf32, #tpu.memory_space<vmem>>, %arg6: memref<1x128xf32, #tpu.memory_space<vmem>>, %arg7: memref<32x128xf32, #tpu.memory_space<vmem>>) attributes {dimension_semantics = [#tpu.dimension_semantics<parallel>], iteration_bounds = array<i64: 2>, scalar_prefetch = 0 : i64, scratch_operands = 0 : i64, tpu.core_type = #tpu.core_type<tc>, window_params = [{transform_indices = @transform_0, window_bounds = array<i64: 32, 1>}, {pipeline_mode = #tpu.pipeline_mode<synchronous>, transform_indices = @transform_1, window_bounds = array<i64: 1, 128>}, {pipeline_mode = #tpu.pipeline_mode<synchronous>, transform_indices = @transform_2, window_bounds = array<i64: 256, 128>}, {pipeline_mode = #tpu.pipeline_mode<synchronous>, transform_indices = @transform_3, window_bounds = array<i64: 1, 128>}, {pipeline_mode = #tpu.pipeline_mode<synchronous>, transform_indices = @transform_4, window_bounds = array<i64: 128, 128>}, {pipeline_mode = #tpu.pipeline_mode<synchronous>, transform_indices = @transform_5, window_bounds = array<i64: 1, 128>}, {transform_indices = @transform_6, window_bounds = array<i64: 32, 128>}]} {
    %c0 = arith.constant 0 : index
    %c0_0 = arith.constant 0 : index
    %0 = vector.load %arg1[%c0, %c0_0] : memref<32x1xf32, #tpu.memory_space<vmem>>, vector<32x1xf32>
    %c0_1 = arith.constant 0 : index
    %c0_2 = arith.constant 0 : index
    %1 = vector.load %arg2[%c0_1, %c0_2] : memref<1x128xf32, #tpu.memory_space<vmem>>, vector<1x128xf32>
    %2 = vector.broadcast %0 : vector<32x1xf32> to vector<32x128xf32>
    %3 = vector.broadcast %1 : vector<1x128xf32> to vector<32x128xf32>
    %4 = arith.mulf %2, %3 : vector<32x128xf32>
    %5 = math.cos %4 : vector<32x128xf32>
    %6 = math.sin %4 : vector<32x128xf32>
    %7 = tpu.concatenate %5, %6 in 1 : vector<32x128xf32>, vector<32x128xf32> -> vector<32x256xf32>
    %c0_3 = arith.constant 0 : index
    %c0_4 = arith.constant 0 : index
    %8 = vector.load %arg3[%c0_3, %c0_4] : memref<256x128xf32, #tpu.memory_space<vmem>>, vector<256x128xf32>
    %cst = arith.constant dense<0.000000e+00> : vector<32x128xf32>
    %9 = tpu.matmul %7, %8, %cst {dimension_numbers = #tpu.dot_dimension_numbers<[1], [0], [0], [1], [0, 0, 1, 1], [], []>} : vector<32x256xf32>, vector<256x128xf32>, vector<32x128xf32> -> vector<32x128xf32>
    %c0_5 = arith.constant 0 : index
    %c0_6 = arith.constant 0 : index
    %10 = vector.load %arg4[%c0_5, %c0_6] : memref<1x128xf32, #tpu.memory_space<vmem>>, vector<1x128xf32>
    %11 = vector.broadcast %10 : vector<1x128xf32> to vector<32x128xf32>
    %12 = arith.addf %9, %11 : vector<32x128xf32>
    %13 = arith.negf %12 : vector<32x128xf32>
    %14 = math.exp %13 : vector<32x128xf32>
    %cst_7 = arith.constant 1.000000e+00 : f32
    %15 = vector.broadcast %cst_7 : f32 to vector<32x128xf32>
    %16 = arith.addf %15, %14 : vector<32x128xf32>
    %17 = arith.divf %15, %16 : vector<32x128xf32>
    %18 = arith.mulf %12, %17 : vector<32x128xf32>
    %c0_8 = arith.constant 0 : index
    %c0_9 = arith.constant 0 : index
    %19 = vector.load %arg5[%c0_8, %c0_9] : memref<128x128xf32, #tpu.memory_space<vmem>>, vector<128x128xf32>
    %cst_10 = arith.constant dense<0.000000e+00> : vector<32x128xf32>
    %20 = tpu.matmul %18, %19, %cst_10 {dimension_numbers = #tpu.dot_dimension_numbers<[1], [0], [0], [1], [0, 0, 1, 1], [], []>} : vector<32x128xf32>, vector<128x128xf32>, vector<32x128xf32> -> vector<32x128xf32>
    %c0_11 = arith.constant 0 : index
    %c0_12 = arith.constant 0 : index
    %21 = vector.load %arg6[%c0_11, %c0_12] : memref<1x128xf32, #tpu.memory_space<vmem>>, vector<1x128xf32>
    %22 = vector.broadcast %21 : vector<1x128xf32> to vector<32x128xf32>
    %23 = arith.addf %20, %22 : vector<32x128xf32>
    %c0_13 = arith.constant 0 : index
    %c0_14 = arith.constant 0 : index
    %24 = vector.load %arg7[%c0_13, %c0_14] : memref<32x128xf32, #tpu.memory_space<vmem>>, vector<32x128xf32>
    tpu.vector_store %arg7[%c0_13, %c0_14], %23 {strides = array<i32>} : memref<32x128xf32, #tpu.memory_space<vmem>>, vector<32x128xf32>,
    return
  }
  func.func @transform_0(%arg0: i32) -> (i32, i32) {
    %c0_i32 = arith.constant 0 : i32
    %c0_i32_0 = arith.constant 0 : i32
    return %arg0, %c0_i32 : i32, i32
  }
  func.func @transform_1(%arg0: i32) -> (i32, i32) {
    %c0_i32 = arith.constant 0 : i32
    %c0_i32_0 = arith.constant 0 : i32
    %c0_i32_1 = arith.constant 0 : i32
    return %c0_i32, %c0_i32_0 : i32, i32
  }
  func.func @transform_2(%arg0: i32) -> (i32, i32) {
    %c0_i32 = arith.constant 0 : i32
    %c0_i32_0 = arith.constant 0 : i32
    %c0_i32_1 = arith.constant 0 : i32
    return %c0_i32, %c0_i32_0 : i32, i32
  }
  func.func @transform_3(%arg0: i32) -> (i32, i32) {
    %c0_i32 = arith.constant 0 : i32
    %c0_i32_0 = arith.constant 0 : i32
    %c0_i32_1 = arith.constant 0 : i32
    return %c0_i32, %c0_i32_0 : i32, i32
  }
  func.func @transform_4(%arg0: i32) -> (i32, i32) {
    %c0_i32 = arith.constant 0 : i32
    %c0_i32_0 = arith.constant 0 : i32
    %c0_i32_1 = arith.constant 0 : i32
    return %c0_i32, %c0_i32_0 : i32, i32
  }
  func.func @transform_5(%arg0: i32) -> (i32, i32) {
    %c0_i32 = arith.constant 0 : i32
    %c0_i32_0 = arith.constant 0 : i32
    %c0_i32_1 = arith.constant 0 : i32
    return %c0_i32, %c0_i32_0 : i32, i32
  }
  func.func @transform_6(%arg0: i32) -> (i32, i32) {
    %c0_i32 = arith.constant 0 : i32
    %c0_i32_0 = arith.constant 0 : i32
    return %arg0, %c0_i32 : i32, i32
  }
}

</mosaic_0001>

<bundles_post_ra>
// kernel: tpu_custom_call.1
= control target key start
LH: loop header
LB: loop body
LE: loop exit
PB: predicated region body
PF: predicated region fallthrough
CT: control target
= control target key end

     0   :  { %11 = vsyncpa [#allocation3], 0  ;;  %s2536_s0 = inlined_call_operand.vmem [shape: f32[64,1], index: 0, kind: input, shape index: {}]   ;;  %s2537_s1 = inlined_call_operand.vmem [shape: f32[1,128], index: 1, kind: input, shape index: {}]   ;;  %s2538_s2 = inlined_call_operand.hbm [shape: f32[256,128], index: 2, kind: input, shape index: {}]   ;;  %s2539_s3 = inlined_call_operand.vmem [shape: f32[1,128], index: 3, kind: input, shape index: {}]   ;;  %s2540_s4 = inlined_call_operand.hbm [shape: f32[128,128], index: 4, kind: input, shape index: {}]   ;;  %s2541_s5 = inlined_call_operand.vmem [shape: f32[1,128], index: 5, kind: input, shape index: {}]   ;;  %s2542_s6 = inlined_call_operand.hbm [shape: f32[64,128], index: 6, kind: output, shape index: {}]  }
   0x1   :  { %12 = vsyncpa [#allocation6], 0 }
   0x2   :  { %13 = vsyncpa [#allocation4], 0 }
   0x3   :  { %15 = vsyncpa [#allocation4 + $0x1], 0  ;;  %s2028_s21 = smov 0   ;;  %s2030_s22 = smov 0  }
   0x4   :  { %s2032_s23 = smov 0   ;;  %s2034_s24 = smov 0  }
   0x5 LB: > { %s2049_s25 = sadd.s32 4294967295, %s1977_s24   ;;  %s1508_s26 = sadd.s32 4294967294, %s1977_s24   ;;  %s1977_s24 = sphi %s2034_s24, %s2566_s24   ;;  %s1973_s23 = sphi %s2032_s23, %s2565_s23   ;;  %s1969_s22 = sphi %s2030_s22, %s2564_s22   ;;  %s1965_s21 = sphi %s2028_s21, %s2563_s21  }
   0x6   : > { %s2053_s27 = sadd.s32 1, %s1977_s24   ;;  %s159_s28 = sadd.s32 1, %s1973_s23 }
   0x7   : > { %s156_s29 = ssub.s32 %s1977_s24, %s2053_s27  ;;  %p169_p0 = scmp.ne.s32.totalorder %s1973_s23, %s1969_s22 }
   0x8   : > { %p157_p1 = scmp.eq.s32.totalorder %s156_s29, 0  ;;  %p170_p2 = scmp.eq.s32.totalorder %s2049_s25, 1 }
   0x9   : > { %p175_p3 = scmp.ne.s32.totalorder %s1969_s22, %s1965_s21  ;;  %p176_p4 = scmp.eq.s32.totalorder %s1508_s26, 1 }
   0xa   : > { %s2064_s30 = scalar_select %p157_p1, %s1973_s23, %s159_s28  }
   0xb   : > { %p2066_p5 = por %p170_p2, %p169_p0  ;;  %p2070_p6 = por %p176_p4, %p175_p3 }
   0xc   : > { %p1509_p7 = scmp.ge.s32.totalorder %s1977_s24, 1  ;;  %p183_p8 = scmp.lt.s32.totalorder %s1977_s24, 3 }
   0xd   : > { %s2546_s7 = scalar_select %p2066_p5, 1, 0 }
   0xe   : > { %s2547_s8 = scalar_select %p2070_p6, 1, 0 }
   0xf   : > { %p2543_p9 = scmp.eq.s32.totalorder %s2049_s25, 0  ;;  %p2077_p10 = pnand %p1509_p7, %p183_p8 }
  0x10   : > { %s1979_s10 = smov [#allocation2]   ;;  %s1980_s13 = smov [#allocation5]  }
  0x11   : > { %s2548_s9 = scalar_select %p2077_p10, 1, 0 }
  0x12   : > { %s198_s11 = sshll.u32 %s1979_s10, 4  ;;  %p1756_p11 = pneg %p2077_p10  ;;  %s199_s11 = int_to_ptr.vmem [resolvable:$true] %s198_s11 }
  0x13   : > { %s214_s14 = sshll.u32 %s1980_s13, 4  ;;  %s1851_s17 = scalar_lea.hbm %s2538_s2, 4096  ;;  %s2089_s14 = int_to_ptr.vmem [resolvable:$true] %s214_s14 }
  0x14   : > { %p2085_p12 = pnand %p2543_p9, %p1756_p11  ;;  %p1852_p13 = scmp.ne.s32.totalorder %s2538_s2, %s1851_s17 }
  0x15   : > { %p1858_p3 = scmp.lt.u32.totalorder %s1851_s17, %s2538_s2 }
  0x16   : > { %p1853_p0 = pneg %p2085_p12 }
  0x18   : > { %p1854_p1 = pnand %p1853_p0, %p1852_p13 }
  0x1a   : > { %p1855_p2 = pneg %p1854_p1 }
  0x1c   : > { %p1860_p4 = pnand %p1858_p3, %p1855_p2 }
  0x1e   : > { %1863 = shalt.err (!%p1860_p4)
}
  0x1f   : > { %s1864_s28 = scalar_lea.vmem %s199_s11, 4096  ;;  %p1872_p9 = scmp.lt.s32.totalorder %s199_s11, %s199_s11 }
  0x20   : > { %p1865_p7 = scmp.ne.s32.totalorder %s199_s11, %s1864_s28  ;;  %p1873_p6 = scmp.lt.s32.totalorder %s1864_s28, %s1864_s28 }
  0x22   : > { %p1867_p8 = pnand %p1865_p7, %p1853_p0  ;;  %p1874_p5 = por %p1873_p6, %p1872_p9 }
  0x24   : > { %p1868_p11 = pneg %p1867_p8 }
  0x26   : > { %p1875_p10 = pnand %p1874_p5, %p1868_p11 }
  0x28   : > { %1878 = shalt.err (!%p1875_p10)
}
  0x29   : > { %s1981_s29 = smov 128   ;;  %s1982_s10 = smov 8  }
  0x2a   : > { %1759 = dma.hbm_to_vmem [thread:$0]  (!%p2085_p12), %s2538_s2, 4096, %s199_s11, [#allocation3], %s1981_s29, %s1981_s29, %s1982_s10  }
  0x2b   : > { %s1879_s18 = scalar_lea.hbm %s2540_s4, 2048 }
  0x2c   : > { %p1880_p13 = scmp.ne.s32.totalorder %s2540_s4, %s1879_s18  ;;  %p1886_p9 = scmp.lt.u32.totalorder %s1879_s18, %s2540_s4 }
  0x2e   : > { %p1882_p5 = pnand %p1880_p13, %p1853_p0 }
  0x30   : > { %p1883_p6 = pneg %p1882_p5 }
  0x32   : > { %p1888_p10 = pnand %p1886_p9, %p1883_p6 }
  0x34   : > { %1891 = shalt.err (!%p1888_p10)
}
  0x35   : > { %s1892_s11 = scalar_lea.vmem %s2089_s14, 2048  ;;  %p1900_p4 = scmp.lt.s32.totalorder %s2089_s14, %s2089_s14 }
  0x36   : > { %p1893_p1 = scmp.ne.s32.totalorder %s2089_s14, %s1892_s11  ;;  %p1901_p7 = scmp.lt.s32.totalorder %s1892_s11, %s1892_s11 }
  0x38   : > { %p1895_p2 = pnand %p1893_p1, %p1853_p0  ;;  %p1902_p8 = por %p1901_p7, %p1900_p4 }
  0x3a   : > { %p1896_p3 = pneg %p1895_p2 }
  0x3c   : > { %p1903_p11 = pnand %p1902_p8, %p1896_p3 }
  0x3e   : > { %1906 = shalt.err (!%p1903_p11)
}
  0x3f   : > { %1762 = dma.hbm_to_vmem [thread:$0]  (!%p2085_p12), %s2540_s4, 2048, %s2089_s14, [#allocation6], %s1981_s29, %s1981_s29, %s1982_s10  }
  0x40   : > { %p2550_p13 = scmp.ne.s32.totalorder %s2548_s9, 0 }
  0x41   : > { %p2551_p5 = scmp.eq.s32.totalorder (!%p2550_p13), %s2049_s25, 0 }
  0x42   : > { %242 = sbr.rel (%p2550_p13) target bundleno = 822 (0x336), region = 44 }
  0x49   : > { %1952 = dma.done.wait (%p2551_p5), [#allocation3], 4096   ;;  %p2552_p0 = pmov %p2551_p5 }
  0x4b   : > { %1954 = vsyncadd (%p2552_p0), [#allocation3], 4294963200  ;;  %p2553_p6 = pmov %p2552_p0 }
  0x4c   : > { %p2554_p9 = pmov %p2552_p0 }
  0x4d   : > { %1956 = dma.done.wait (%p2553_p6), [#allocation6], 2048  }
  0x4e   : > { %1958 = vsyncadd (%p2554_p9), [#allocation6], 4294965248  ;;  %s1517_s12 = sshll.u32 %s2049_s25, 2  ;;  %v1983_v0 = vmov 0   ;;  %v1162_v5 = vld [vmem:[#allocation2 + $0x80] sm:$0xff]  ;;  %v1163_v6 = vld [vmem:[#allocation2 + $0x88] sm:$0xff] }
  0x4f   : > { %1818 = vset.pattern.permute.xlu1 %v1983_v0  ;;  %1817 = vset.pattern.permute.xlu0 %v1983_v0  ;;  %p277_p12 = scmp.lt.s32.totalorder %s1517_s12, 7  ;;  %v1666_v7 = vpack.c.bf16 %v1163_v6, %v1162_v5  ;;  %v1146_v8 = vld [vmem:[#allocation2] sm:$0xff]  ;;  %v1147_v9 = vld [vmem:[#allocation2 + $0x8] sm:$0xff]  ;;  %v1164_v11 = vld [vmem:[#allocation2 + $0x90] sm:$0xff]  ;;  %s273_s20 = sand.u32 1, %s1969_s22  }
  0x50   : > { %v1668_v10 = vpack.c.bf16 %v1147_v9, %v1146_v8  ;;  %v1165_v12 = vld [vmem:[#allocation2 + $0x98] sm:$0xff]  ;;  %v1148_v14 = vld [vmem:[#allocation2 + $0x10] sm:$0xff]  ;;  %v1166_v17 = vld [vmem:[#allocation2 + $0xa0] sm:$0xff]  ;;  %s1516_s26 = sshll.u32 %s273_s20, 5  ;;  %p2561_p1 = scmp.ne.s32.totalorder %s2546_s7, 0 }
  0x51   : > { %s2568_s12 = smov (!%p277_p12, %s1517_s12), 7  ;;  %1667 = vmatprep.subr.bf16.mxu0 %v1666_v7  ;;  %v1670_v13 = vpack.c.bf16 %v1165_v12, %v1164_v11  ;;  %v1149_v15 = vld [vmem:[#allocation2 + $0x18] sm:$0xff]  ;;  %v1167_v18 = vld [vmem:[#allocation2 + $0xa8] sm:$0xff]  ;;  %v1150_v20 = vld [vmem:[#allocation2 + $0x20] sm:$0xff]  ;;  %s275_s13 = scalar_lea.vmem [#allocation7], %s1516_s26 }
  0x52   : > { %s1518_s9 = sshll.u32 %s2568_s12, 3  ;;  %1669 = vmatpush3.bf16.msra.mxu0 %v1668_v10  ;;  %v1672_v16 = vpack.c.bf16 %v1149_v15, %v1148_v14  ;;  %v1674_v19 = vpack.c.bf16 %v1167_v18, %v1166_v17  ;;  %v1151_v21 = vld [vmem:[#allocation2 + $0x28] sm:$0xff]  ;;  %v1168_v23 = vld [vmem:[#allocation2 + $0xb0] sm:$0xff]  ;;  %v1169_v24 = vld [vmem:[#allocation2 + $0xb8] sm:$0xff]  ;;  %s1424_s15 = sshll.u32 %s275_s13, 4  ;;  %s2488_s15 = int_to_ptr.vmem [resolvable:$true] %s1424_s15 }
  0x53   : > { %s280_s10 = scalar_lea.vmem %s2536_s0, %s1518_s9  ;;  %1671 = vmatprep.subr.bf16.mxu0 %v1670_v13  ;;  %v1676_v22 = vpack.c.bf16 %v1151_v21, %v1150_v20  ;;  %v1678_v25 = vpack.c.bf16 %v1169_v24, %v1168_v23  ;;  %v1152_v26 = vld [vmem:[#allocation2 + $0x30] sm:$0xff]  ;;  %v1153_v27 = vld [vmem:[#allocation2 + $0x38] sm:$0xff]  ;;  %v1170_v29 = vld [vmem:[#allocation2 + $0xc0] sm:$0xff]  ;;  %v1985_v21 = vmov 2475754826   ;;  %s1563_s12 = sshll.u32 %s2049_s25, 9 }
  0x54   : > { %v285_v1 = vld [vmem:[%s280_s10 + $0x10] sm:$0xff]  ;;  %v283_v2 = vld [vmem:[%s280_s10] sm:$0xff]  ;;  %v286_v3 = vld [vmem:[%s280_s10 + $0x18] sm:$0xff]  ;;  %v1680_v28 = vpack.c.bf16 %v1153_v27, %v1152_v26  ;;  %v1986_v23 = vmov 2131351028   ;;  %s2493_s29 = scalar_lea.hbm %s2542_s6, %s1563_s12  ;;  %s1907_s16 = scalar_lea.vmem %s2488_s15, 512 }
  0x55   : > { %300 = vperm.xlu1 %1818, %v285_v1   ;;  %290 = vperm.xlu0 %1817, %v283_v2   ;;  %v284_v4 = vld [vmem:[%s280_s10 + $0x8] sm:$0xff]  ;;  %v1154_v32 = vld [vmem:[#allocation2 + $0x40] sm:$0xff]  ;;  %v1172_v35 = vld [vmem:[#allocation2 + $0xd0] sm:$0xff]  ;;  %v1988_v27 = vmov 920167782   ;;  %s2495_s10 = scalar_lea.sflag [#allocation4], %s273_s20  ;;  %p1908_p10 = scmp.ne.s32.totalorder %s2488_s15, %s1907_s16 }
  0x56   : > { %1673 = vmatpush3.bf16.msra.mxu0 %v1672_v16  ;;  %v1171_v30 = vld [vmem:[#allocation2 + $0xc8] sm:$0xff]  ;;  %v1173_v36 = vld [vmem:[#allocation2 + $0xd8] sm:$0xff]  ;;  %v1156_v37 = vld [vmem:[#allocation2 + $0x50] sm:$0xff]  ;;  %s1990_s25 = smov [#allocation7]  }
  0x57   : > { %1675 = vmatprep.subr.bf16.mxu0 %v1674_v19  ;;  %v1682_v31 = vpack.c.bf16 %v1171_v30, %v1170_v29  ;;  %v1155_v33 = vld [vmem:[#allocation2 + $0x48] sm:$0xff]  ;;  %v1686_v38 = vpack.c.bf16 %v1173_v36, %v1172_v35  ;;  %v1157_v39 = vld [vmem:[#allocation2 + $0x58] sm:$0xff]  ;;  %v1174_v40 = vld [vmem:[#allocation2 + $0xe0] sm:$0xff]  ;;  %v1984_v19 = vmov 683565275   ;;  %p1909_p2 = pnand %p1908_p10, %p2561_p1  ;;  %s1911_s17 = sshll.u32 %s1990_s25, 4  ;;  %s1912_s17 = int_to_ptr.vmem [resolvable:$false] %s1911_s17 }
  0x58   : > { %v1684_v34 = vpack.c.bf16 %v1155_v33, %v1154_v32  ;;  %v1175_v41 = vld [vmem:[#allocation2 + $0xe8] sm:$0xff]  ;;  %v1688_v42 = vpack.c.bf16 %v1157_v39, %v1156_v37  ;;  %v1158_v44 = vld [vmem:[#allocation2 + $0x60] sm:$0xff]  ;;  %v1176_v46 = vld [vmem:[#allocation2 + $0xf0] sm:$0xff]  ;;  %v1989_v36 = vmov 1326507024   ;;  %s1913_s18 = scalar_lea.vmem %s1912_s17, 1024  ;;  %p1914_p4 = scmp.lt.s32.totalorder %s2488_s15, %s1912_s17 }
  0x59   : > { %305 = vperm.xlu1 %1818, %v286_v3   ;;  %295 = vperm.xlu0 %1817, %v284_v4   ;;  %v1690_v43 = vpack.c.bf16 %v1175_v41, %v1174_v40  ;;  %v1159_v45 = vld [vmem:[#allocation2 + $0x68] sm:$0xff]  ;;  %v1177_v47 = vld [vmem:[#allocation2 + $0xf8] sm:$0xff]  ;;  %v1160_v50 = vld [vmem:[#allocation2 + $0x70] sm:$0xff]  ;;  %p1910_p3 = pneg %p1909_p2  ;;  %p1915_p7 = scmp.lt.s32.totalorder %s1913_s18, %s1907_s16 }
  0x5a   : > { %1677 = vmatpush3.bf16.msra.mxu0 %v1676_v22  ;;  %v1692_v48 = vpack.c.bf16 %v1159_v45, %v1158_v44  ;;  %v1694_v49 = vpack.c.bf16 %v1177_v47, %v1176_v46  ;;  %v1161_v51 = vld [vmem:[#allocation2 + $0x78] sm:$0xff]  ;;  %v1519_v53 = vld [vmem:[%s2537_s1] ss:$0 sm:$0xff] }
  0x5b   : > { %1679 = vmatprep.subr.bf16.mxu0 %v1678_v25  ;;  %v1696_v52 = vpack.c.bf16 %v1161_v51, %v1160_v50  ;;  %v1987_v25 = vmov 2102212464   ;;  %p1916_p8 = por %p1915_p7, %p1914_p4 }
  0x5d   : > { %p1917_p11 = pnand %p1916_p8, %p1910_p3 }
  0x5e   : > { %1681 = vmatpush3.bf16.msra.mxu0 %v1680_v28 }
  0x5f   : > { %1683 = vmatprep.subr.bf16.mxu0 %v1682_v31 }
  0x62   : > { %1685 = vmatpush3.bf16.msra.mxu0 %v1684_v34 }
  0x63   : > { %1687 = vmatprep.subr.bf16.mxu0 %v1686_v38 }
  0x66   : > { %1689 = vmatpush3.bf16.msra.mxu0 %v1688_v42 }
  0x67   : > { %1691 = vmatprep.subr.bf16.mxu0 %v1690_v43 }
  0x6a   : > { %1693 = vmatpush3.bf16.msra.mxu0 %v1692_v48 }
  0x6b   : > { %1695 = vmatprep.subr.bf16.mxu0 %v1694_v49 }
  0x6e   : > { %1697 = vmatpush3.bf16.msra.mxu0 %v1696_v52 }
  0xd4   : > { %v301_v54 = vpop.permute.xlu1 %300  ;;  %v291_v55 = vpop.permute.xlu0 %290 }
  0xd5   : > { %v2155_v56 = vmul.f32 %v1519_v53, %v301_v54  ;;  %v2157_v57 = vmul.f32 %v1519_v53, %v291_v55 }
  0xd7   : > { %v524_v58 = vand.u32 2147483647, %v2155_v56  ;;  %v527_v59 = vand.u32 2139095040, %v2155_v56  ;;  %v321_v60 = vand.u32 2139095040, %v2157_v57  ;;  %v318_v17 = vand.u32 2147483647, %v2157_v57 }
  0xd8   : > { %v306_v61 = vpop.permute.xlu1 %305  ;;  %v296_v2 = vpop.permute.xlu0 %295 }
  0xd9   : > { %v528_v62 = vshrl.u32 %v527_v59, 23  ;;  %v2162_v63 = vmul.f32 %v1519_v53, %v306_v61  ;;  %v531_v0 = vand.u32 8388607, %v524_v58  ;;  %v322_v1 = vshrl.u32 %v321_v60, 23 }
  0xda   : > { %v2167_v6 = vmul.f32 %v1519_v53, %v296_v2 }
  0xdb   : > { %v1528_v3 = vadd.s32 4294967169, %v528_v62  ;;  %v630_v4 = vand.u32 2139095040, %v2162_v63  ;;  %v532_v7 = vor.u32 8388608, %v531_v0  ;;  %v1520_v8 = vadd.s32 4294967169, %v322_v1 }
  0xdc   : > { %v627_v10 = vand.u32 2147483647, %v2162_v63  ;;  %v424_v13 = vand.u32 2139095040, %v2167_v6 }
  0xdd   : > { %v534_v5 = vadd.s32 1, %v1528_v3  ;;  %v631_v11 = vshrl.u32 %v630_v4, 23  ;;  %v2171_v15 = vshll.u32 %v532_v7, 8  ;;  %v328_v16 = vadd.s32 1, %v1520_v8 }
  0xde   : > { %v634_v30 = vand.u32 8388607, %v627_v10  ;;  %v425_v34 = vshrl.u32 %v424_v13, 23  ;;  %v2206_v7 = vand.u32 8388607, %v318_v17 }
  0xdf   : > { %vm535_vm0 = vcmp.gt.s32.totalorder %v534_v5, 0  ;;  %v1532_v29 = vadd.s32 4294967169, %v631_v11  ;;  %vm329_vm3 = vcmp.gt.s32.totalorder %v328_v16, 0 }
  0xe0   : > { %v536_v9 = vsel %vm535_vm0, %v534_v5, 0  ;;  %v1524_v50 = vadd.s32 4294967169, %v425_v34  ;;  %v2189_v53 = vsel %vm329_vm3, %v328_v16, 0  ;;  %v635_v54 = vor.u32 8388608, %v634_v30 }
  0xe1   : > { %v538_v12 = vand.u32 31, %v536_v9  ;;  %v537_v14 = vshrl.u32 %v536_v9, 5  ;;  %v637_v49 = vadd.s32 1, %v1532_v29  ;;  %v2209_v8 = vand.u32 31, %v2189_v53 }
  0xe2   : > { %v431_v3 = vadd.s32 1, %v1524_v50  ;;  %v2211_v11 = vshll.u32 %v635_v54, 8 }
  0xe3   : > { %v539_v18 = vsub.s32 32, %v538_v12  ;;  %v541_v20 = vshll.u32 %v1984_v19, %v538_v12  ;;  %v544_v22 = vshll.u32 %v1985_v21, %v538_v12  ;;  %v547_v24 = vshll.u32 %v1986_v23, %v538_v12 }
  0xe4   : > { %v550_v26 = vshll.u32 %v1987_v25, %v538_v12  ;;  %v553_v28 = vshll.u32 %v1988_v27, %v538_v12  ;;  %vm556_vm1 = vcmp.lt.s32.totalorder %v537_v14, 1  ;;  %vm559_vm2 = vcmp.lt.s32.totalorder %v537_v14, 4 }
  0xe5   : > { %v542_v31 = vshrl.u32 %v1985_v21, %v539_v18  ;;  %v545_v32 = vshrl.u32 %v1986_v23, %v539_v18  ;;  %v548_v33 = vshrl.u32 %v1987_v25, %v539_v18  ;;  %v551_v35 = vshrl.u32 %v1988_v27, %v539_v18 }
  0xe6   : > { %v554_v37 = vshrl.u32 %v1989_v36, %v539_v18  ;;  %v540_v41 = vshrl.u32 %v1984_v19, %v539_v18  ;;  %vm558_vm4 = vcmp.lt.s32.totalorder %v537_v14, 3  ;;  %vm557_vm5 = vcmp.lt.s32.totalorder %v537_v14, 2 }
  0xe7   : > { %v543_v38 = vor.u32 %v542_v31, %v541_v20  ;;  %v546_v39 = vor.u32 %v545_v32, %v544_v22  ;;  %v549_v40 = vor.u32 %v548_v33, %v547_v24  ;;  %v552_v42 = vor.u32 %v551_v35, %v550_v26 }
  0xe8   : > { %v555_v43 = vor.u32 %v554_v37, %v553_v28  ;;  %vm638_vm6 = vcmp.gt.s32.totalorder %v637_v49, 0  ;;  %v421_v12 = vand.u32 2147483647, %v2167_v6  ;;  %vm432_vm8 = vcmp.gt.s32.totalorder %v431_v3, 0 }
  0xe9   : > { %v561_v44 = vsel %vm559_vm2, %v549_v40, 2102212464  ;;  %v564_v45 = vsel %vm556_vm1, %v543_v38, %v546_v39  ;;  %v568_v46 = vsel %vm556_vm1, %v546_v39, %v549_v40  ;;  %v565_v47 = vsel %vm559_vm2, %v552_v42, 920167782 }
  0xea   : > { %v569_v48 = vsel %vm559_vm2, %v555_v43, 1326507024  ;;  %v566_v51 = vsel %vm558_vm4, %v549_v40, %v565_v47  ;;  %v560_v55 = vsel %vm556_vm1, %v540_v41, %v543_v38  ;;  %v562_v59 = vsel %vm558_vm4, %v546_v39, %v561_v44 }
  0xeb   : > { %v570_v52 = vsel %vm558_vm4, %v552_v42, %v569_v48  ;;  %v567_v60 = vsel %vm557_vm5, %v564_v45, %v566_v51  ;;  %v563_v4 = vsel %vm557_vm5, %v560_v55, %v562_v59  ;;  %v639_v5 = vsel %vm638_vm6, %v637_v49, 0 }
  0xec   : > { %v571_v61 = vsel %vm557_vm5, %v568_v46, %v570_v52  ;;  %v2199_v1 = vmul.u32.u64.low %v2171_v15, %v567_v60  ;;  %v2200_v2 = vmul.u32.u64.high %v2171_v15, %v567_v60, %v2199_v1  ;;  %v641_v9 = vand.u32 31, %v639_v5 }
  0xed   : > { %v2195_v62 = vmul.u32.u64.low %v2171_v15, %v571_v61  ;;  %v2196_v0 = vmul.u32.u64.high %v2171_v15, %v571_v61, %v2195_v62  ;;  %v640_v14 = vshrl.u32 %v639_v5, 5  ;;  %v579_v16 = vmul.u32 %v2171_v15, %v563_v4 }
  0xee   : > { %v582_v13 = vadd.s32 1, %v2200_v2  ;;  %v642_v18 = vsub.s32 32, %v641_v9  ;;  %v644_v20 = vshll.u32 %v1984_v19, %v641_v9  ;;  %v647_v22 = vshll.u32 %v1985_v21, %v641_v9 }
  0xef   : > { %vm581_vm7 = vc.u32 %v2196_v0, %v2199_v1  ;;  %v650_v26 = vshll.u32 %v1986_v23, %v641_v9  ;;  %v653_v28 = vshll.u32 %v1987_v25, %v641_v9  ;;  %v656_v29 = vshll.u32 %v1988_v27, %v641_v9 }
  0xf0   : > { %v583_v24 = vsel %vm581_vm7, %v582_v13, %v2200_v2  ;;  %v645_v31 = vshrl.u32 %v1985_v21, %v642_v18  ;;  %v648_v32 = vshrl.u32 %v1986_v23, %v642_v18  ;;  %v433_v33 = vsel %vm432_vm8, %v431_v3, 0 }
  0xf1   : > { %v584_v30 = vadd.s32 %v583_v24, %v579_v16  ;;  %v651_v15 = vshrl.u32 %v1987_v25, %v642_v18  ;;  %v654_v34 = vshrl.u32 %v1988_v27, %v642_v18  ;;  %v657_v35 = vshrl.u32 %v1989_v36, %v642_v18 }
  0xf2   : > { %vm659_vm9 = vcmp.lt.s32.totalorder %v640_v14, 1  ;;  %v643_v38 = vshrl.u32 %v1984_v19, %v642_v18  ;;  %v646_v39 = vor.u32 %v645_v31, %v644_v20  ;;  %v649_v40 = vor.u32 %v648_v32, %v647_v22 }
  0xf3   : > { %v585_v37 = vadd.s32 536870912, %v584_v30  ;;  %v652_v41 = vor.u32 %v651_v15, %v650_v26  ;;  %v655_v42 = vor.u32 %v654_v34, %v653_v28  ;;  %v658_v43 = vor.u32 %v657_v35, %v656_v29 }
  0xf4   : > { %vm660_vm10 = vcmp.lt.s32.totalorder %v640_v14, 2  ;;  %vm661_vm11 = vcmp.lt.s32.totalorder %v640_v14, 3  ;;  %vm662_vm12 = vcmp.lt.s32.totalorder %v640_v14, 4  ;;  %v667_v45 = vsel %vm659_vm9, %v646_v39, %v649_v40 }
  0xf5   : > { %v2230_v44 = vshrl.u32 %v585_v37, 30  ;;  %v664_v46 = vsel %vm662_vm12, %v652_v41, 2102212464  ;;  %v668_v47 = vsel %vm662_vm12, %v655_v42, 920167782  ;;  %v671_v48 = vsel %vm659_vm9, %v649_v40, %v652_v41 }
  0xf6   : > { %v672_v49 = vsel %vm662_vm12, %v658_v43, 1326507024  ;;  %v663_v51 = vsel %vm659_vm9, %v643_v38, %v646_v39  ;;  %v669_v52 = vsel %vm661_vm11, %v652_v41, %v668_v47  ;;  %v665_v55 = vsel %vm661_vm11, %v649_v40, %v664_v46 }
  0xf7   : > { %v587_v50 = vshll.u32 %v2230_v44, 30  ;;  %v673_v54 = vsel %vm661_vm11, %v655_v42, %v672_v49  ;;  %v670_v59 = vsel %vm660_vm10, %v667_v45, %v669_v52  ;;  %v435_v61 = vand.u32 31, %v433_v33 }
  0xf8   : > { %v674_v60 = vsel %vm660_vm10, %v671_v48, %v673_v54  ;;  %v2239_v62 = vshrl.u32 %v2189_v53, 5  ;;  %v428_v4 = vand.u32 8388607, %v421_v12  ;;  %v2248_v5 = vsub.s32 32, %v2209_v8 }
  0xf9   : > { %v2242_v2 = vmul.u32.u64.low %v2211_v11, %v674_v60  ;;  %v2243_v3 = vmul.u32.u64.high %v2211_v11, %v674_v60, %v2242_v2  ;;  %v2251_v9 = vmul.u32.u64.low %v2211_v11, %v670_v59  ;;  %v2252_v13 = vmul.u32.u64.high %v2211_v11, %v670_v59, %v2251_v9 }
  0xfa   : > { %v436_v16 = vsub.s32 32, %v435_v61  ;;  %v2255_v18 = vsub.s32 %v584_v30, %v587_v50  ;;  %v666_v53 = vsel %vm660_vm10, %v663_v51, %v665_v55  ;;  %v434_v20 = vshrl.u32 %v433_v33, 5 }
  0xfb   : > { %v438_v22 = vshll.u32 %v1984_v19, %v435_v61  ;;  %v441_v26 = vshll.u32 %v1985_v21, %v435_v61  ;;  %vm684_vm13 = vc.u32 %v2243_v3, %v2251_v9  ;;  %v444_v31 = vshll.u32 %v1986_v23, %v435_v61 }
  0xfc   : > { %v439_v24 = vshrl.u32 %v1985_v21, %v436_v16  ;;  %v442_v28 = vshrl.u32 %v1986_v23, %v436_v16  ;;  %v445_v29 = vshrl.u32 %v1987_v25, %v436_v16  ;;  %v447_v30 = vshll.u32 %v1987_v25, %v435_v61 }
  0xfd   : > { %v448_v14 = vshrl.u32 %v1988_v27, %v436_v16  ;;  %v685_v32 = vadd.s32 1, %v2252_v13  ;;  %v429_v33 = vor.u32 8388608, %v428_v4  ;;  %v682_v35 = vmul.u32 %v2211_v11, %v666_v53 }
  0xfe   : > { %v440_v15 = vor.u32 %v439_v24, %v438_v22  ;;  %v443_v34 = vor.u32 %v442_v28, %v441_v26  ;;  %v446_v37 = vor.u32 %v445_v29, %v444_v31  ;;  %v451_v39 = vshrl.u32 %v1989_v36, %v436_v16 }
  0xff   : > { %v449_v38 = vor.u32 %v448_v14, %v447_v30  ;;  %v344_v40 = vshll.u32 %v1987_v25, %v2209_v8  ;;  %v345_v41 = vshrl.u32 %v1988_v27, %v2248_v5  ;;  %v686_v42 = vsel %vm684_vm13, %v685_v32, %v2252_v13 }
 0x100   : > { %v450_v43 = vshll.u32 %v1988_v27, %v435_v61  ;;  %v590_v45 = vsub.s32 0, %v2255_v18  ;;  %v687_v46 = vadd.s32 %v686_v42, %v682_v35  ;;  %vm453_vm14 = vcmp.lt.s32.totalorder %v434_v20, 1 }
 0x101   : > { %vm456_vm15 = vcmp.lt.s32.totalorder %v434_v20, 4  ;;  %vm455_vm0 = vcmp.lt.s32.totalorder %v434_v20, 3  ;;  %v461_v47 = vsel %vm453_vm14, %v440_v15, %v443_v34  ;;  %v347_v49 = vshll.u32 %v1988_v27, %v2209_v8 }
 0x102   : > { %v452_v11 = vor.u32 %v451_v39, %v450_v43  ;;  %v462_v48 = vsel %vm456_vm15, %v449_v38, 920167782  ;;  %v688_v50 = vadd.s32 536870912, %v687_v46  ;;  %vm454_vm1 = vcmp.lt.s32.totalorder %v434_v20, 2 }
 0x103   : > { %v463_v51 = vsel %vm455_vm0, %v446_v37, %v462_v48  ;;  %v348_v52 = vshrl.u32 %v1989_v36, %v2248_v5  ;;  %v458_v54 = vsel %vm456_vm15, %v446_v37, 2102212464  ;;  %v469_v59 = vshll.u32 %v429_v33, 8 }
 0x104   : > { %v464_v55 = vsel %vm454_vm1, %v461_v47, %v463_v51  ;;  %v346_v60 = vor.u32 %v345_v41, %v344_v40  ;;  %v2287_v61 = vshrl.u32 %v688_v50, 30  ;;  %v437_v2 = vshrl.u32 %v1984_v19, %v436_v16 }
 0x105   : > { %v465_v4 = vsel %vm453_vm14, %v443_v34, %v446_v37  ;;  %v1529_v27 = vmin.u32 %v590_v45, %v2255_v18  ;;  %v466_v13 = vsel %vm456_vm15, %v452_v11, 1326507024  ;;  %v459_v26 = vsel %vm455_vm0, %v443_v34, %v458_v54 }
 0x106   : > { %v2293_v53 = vmul.u32.u64.low %v469_v59, %v464_v55  ;;  %v2294_v22 = vmul.u32.u64.high %v469_v59, %v464_v55, %v2293_v53  ;;  %v690_v36 = vshll.u32 %v2287_v61, 30  ;;  %v457_v24 = vsel %vm453_vm14, %v437_v2, %v440_v15 }
 0x107   : > { %v467_v28 = vsel %vm455_vm0, %v449_v38, %v466_v13  ;;  %v349_v29 = vor.u32 %v348_v52, %v347_v49  ;;  %vm353_vm2 = vcmp.lt.s32.totalorder %v2239_v62, 4  ;;  %v336_v31 = vshrl.u32 %v1985_v21, %v2248_v5 }
 0x108   : > { %v468_v16 = vsel %vm454_vm1, %v465_v4, %v467_v28  ;;  %v2305_v30 = vsub.s32 %v687_v46, %v690_v36  ;;  %v335_v14 = vshll.u32 %v1984_v19, %v2209_v8  ;;  %v338_v32 = vshll.u32 %v1985_v21, %v2209_v8 }
 0x109   : > { %v339_v33 = vshrl.u32 %v1986_v23, %v2248_v5  ;;  %v592_v15 = vclz %v1529_v27  ;;  %v460_v34 = vsel %vm454_vm1, %v457_v24, %v459_v26  ;;  %v479_v39 = vadd.s32 1, %v2294_v22 }
 0x10a   : > { %v2314_v35 = vmul.u32.u64.low %v469_v59, %v468_v16  ;;  %v2315_v37 = vmul.u32.u64.high %v469_v59, %v468_v16, %v2314_v35  ;;  %v693_v38 = vsub.s32 0, %v2305_v30  ;;  %v337_v40 = vor.u32 %v336_v31, %v335_v14 }
 0x10b   : > { %v340_v41 = vor.u32 %v339_v33, %v338_v32  ;;  %v363_v42 = vsel %vm353_vm2, %v349_v29, 1326507024  ;;  %v341_v21 = vshll.u32 %v1986_v23, %v2209_v8  ;;  %v342_v43 = vshrl.u32 %v1987_v25, %v2248_v5 }
 0x10c   : > { %v359_v20 = vsel %vm353_vm2, %v346_v60, 920167782  ;;  %v1533_v45 = vmin.u32 %v693_v38, %v2305_v30  ;;  %v476_v46 = vmul.u32 %v469_v59, %v460_v34  ;;  %v326_v11 = vor.u32 8388608, %v2206_v7 }
 0x10d   : > { %vm478_vm3 = vc.u32 %v2315_v37, %v2293_v53  ;;  %v343_v47 = vor.u32 %v342_v43, %v341_v21  ;;  %vm350_vm4 = vcmp.lt.s32.totalorder %v2239_v62, 1  ;;  %vm352_vm5 = vcmp.lt.s32.totalorder %v2239_v62, 3 }
 0x10e   : > { %v1530_v23 = vadd.s32 4294967294, %v592_v15  ;;  %v480_v8 = vsel %vm478_vm3, %v479_v39, %v2294_v22  ;;  %v358_v25 = vsel %vm350_vm4, %v337_v40, %v340_v41  ;;  %v364_v48 = vsel %vm352_vm5, %v346_v60, %v363_v42 }
 0x10f   : > { %v695_v49 = vclz %v1533_v45  ;;  %v481_v50 = vadd.s32 %v480_v8, %v476_v46  ;;  %v360_v7 = vsel %vm352_vm5, %v343_v47, %v359_v20  ;;  %v362_v51 = vsel %vm350_vm4, %v340_v41, %v343_v47 }
 0x110   : > { %vm351_vm6 = vcmp.lt.s32.totalorder %v2239_v62, 2  ;;  %v355_v54 = vsel %vm353_vm2, %v343_v47, 2102212464  ;;  %v366_v59 = vshll.u32 %v326_v11, 8  ;;  %vm1531_vm7 = vcmp.lt.s32.totalorder %v1530_v23, 0 }
 0x111   : > { %v482_v52 = vadd.s32 536870912, %v481_v50  ;;  %v365_v55 = vsel %vm351_vm6, %v362_v51, %v364_v48  ;;  %v334_v60 = vshrl.u32 %v1984_v19, %v2248_v5  ;;  %v361_v2 = vsel %vm351_vm6, %v358_v25, %v360_v7 }
 0x112   : > { %v1534_v4 = vadd.s32 4294967294, %v695_v49  ;;  %v2353_v13 = vmul.u32.u64.low %v366_v59, %v365_v55  ;;  %v2354_v22 = vmul.u32.u64.high %v366_v59, %v365_v55, %v2353_v13  ;;  %v356_v24 = vsel %vm352_vm5, %v340_v41, %v355_v54 }
 0x113   : > { %v2351_v27 = vshrl.u32 %v482_v52, 30  ;;  %v354_v36 = vsel %vm350_vm4, %v334_v60, %v337_v40  ;;  %v595_v26 = vsel %vm1531_vm7, 0, %v1530_v23  ;;  %v580_v43 = vadd.s32 %v2199_v1, %v2196_v0 }
 0x114   : > { %v2361_v29 = vmul.u32.u64.low %v366_v59, %v361_v2  ;;  %v2362_v19 = vmul.u32.u64.high %v366_v59, %v361_v2, %v2361_v29  ;;  %vm1535_vm8 = vcmp.lt.s32.totalorder %v1534_v4, 0  ;;  %v357_v16 = vsel %vm351_vm6, %v354_v36, %v356_v24 }
 0x115   : > { %v484_v28 = vshll.u32 %v2351_v27, 30  ;;  %v600_v31 = vsub.s32 4294967266, %v595_v26  ;;  %v698_v33 = vsel %vm1535_vm8, 0, %v1534_v4  ;;  %v373_v15 = vmul.u32 %v366_v59, %v357_v16 }
 0x116   : > { %vm375_vm9 = vc.u32 %v2354_v22, %v2361_v29  ;;  %v376_v32 = vadd.s32 1, %v2362_v19  ;;  %v703_v40 = vsub.s32 4294967266, %v698_v33  ;;  %v596_v42 = vsub.s32 32, %v595_v26 }
 0x117   : > { %v485_v5 = vsub.s32 %v481_v50, %v484_v28  ;;  %v601_v38 = vadd.s32 127, %v600_v31  ;;  %v699_v8 = vsub.s32 32, %v698_v33  ;;  %v477_v25 = vadd.s32 %v2293_v53, %v2315_v37 }
 0x118   : > { %v377_v35 = vsel %vm375_vm9, %v376_v32, %v2362_v19  ;;  %v704_v46 = vadd.s32 127, %v703_v40  ;;  %v598_v11 = vshrl.u32 %v580_v43, %v596_v42  ;;  %v597_v50 = vshll.u32 %v2255_v18, %v595_v26 }
 0x119   : > { %v487_v14 = vsub.s32 0, %v485_v5  ;;  %v378_v39 = vadd.s32 %v377_v35, %v373_v15  ;;  %v602_v20 = vshll.u32 %v601_v38, 23  ;;  %v683_v0 = vadd.s32 %v2251_v9, %v2243_v3 }
 0x11a   : > { %v705_v51 = vshll.u32 %v704_v46, 23  ;;  %v599_v60 = vor.u32 %v598_v11, %v597_v50  ;;  %v700_v37 = vshll.u32 %v2305_v30, %v698_v33  ;;  %v374_v35 = vadd.s32 %v2361_v29, %v2354_v22 }
 0x11b   : > { %v1525_v34 = vmin.u32 %v487_v14, %v485_v5  ;;  %v379_v21 = vadd.s32 536870912, %v378_v39  ;;  %v603_v7 = vor.u32 4788187, %v602_v20  ;;  %v701_v2 = vshrl.u32 %v683_v0, %v699_v8 }
 0x11c   : > { %v706_v24 = vor.u32 4788187, %v705_v51  ;;  %v606_v28 = vcvt.s32.f32 %v599_v60  ;;  %vm423_vm12 = vcmp.lt.s32.totalorder %v2167_v6, 0  ;;  %vm526_vm13 = vcmp.lt.s32.totalorder %v2155_v56, 0 }
 0x11d   : > { %v489_v41 = vclz %v1525_v34  ;;  %v2373_v45 = vshrl.u32 %v379_v21, 30  ;;  %v604_v53 = vand.u32 2147483647, %v603_v7  ;;  %v702_v19 = vor.u32 %v701_v2, %v700_v37 }
 0x11e   : > { %v707_v31 = vand.u32 2147483647, %v706_v24  ;;  %vm2390_vm14 = vcmp.le.f32.partialorder %v421_v12, 0.7853982  ;;  %v507_v46 = vsub.s32 4, %v2351_v27  ;;  %vm629_vm15 = vcmp.lt.s32.totalorder %v2162_v63, 0 }
 0x11f   : > { %v1526_v62 = vadd.s32 4294967294, %v489_v41  ;;  %v381_v23 = vshll.u32 %v2373_v45, 30  ;;  %v709_v32 = vcvt.s32.f32 %v702_v19  ;;  %vm2403_vm0 = vcmp.le.f32.partialorder %v524_v58, 0.7853982 }
 0x120   : > { %v404_v50 = vsub.s32 4, %v2373_v45  ;;  %v508_v58 = vsel %vm423_vm12, %v507_v46, %v2351_v27  ;;  %vm320_vm1 = vcmp.lt.s32.totalorder %v2157_v57, 0  ;;  %vm2423_vm2 = vcmp.le.f32.partialorder %v627_v10, 0.7853982 }
 0x121   : > { %vm1527_vm10 = vcmp.lt.s32.totalorder %v1526_v62, 0  ;;  %v382_v1 = vsub.s32 %v378_v39, %v381_v23  ;;  %v710_v39 = vmul.f32 %v709_v32, %v707_v31  ;;  %v610_v23 = vsub.s32 4, %v2230_v44 }
 0x122   : > { %v492_v47 = vsel %vm1527_vm10, 0, %v1526_v62  ;;  %vm319_vm3 = vcmp.le.f32.partialorder %v318_v17, 0.7853982  ;;  %v713_v2 = vsub.s32 4, %v2287_v61  ;;  %vm410_vm5 = vweird.f32 %v2157_v57 }
 0x123   : > { %v493_v48 = vsub.s32 32, %v492_v47  ;;  %v497_v49 = vsub.s32 4294967266, %v492_v47  ;;  %v494_v52 = vshll.u32 %v485_v5, %v492_v47  ;;  %v384_v59 = vsub.s32 0, %v382_v1 }
 0x124   : > { %v607_v5 = vmul.f32 %v606_v28, %v604_v53  ;;  %v711_v20 = vxor.u32 2147483648, %v710_v39  ;;  %v611_v0 = vsel %vm526_vm13, %v610_v23, %v2230_v44  ;;  %v714_v37 = vsel %vm629_vm15, %v713_v2, %v2287_v61  ;;  %v1299_v2 = vld [vmem:[#allocation5 + $0x8] sm:$0xff] }
 0x125   : > { %v495_v54 = vshrl.u32 %v477_v25, %v493_v48  ;;  %v498_v55 = vadd.s32 127, %v497_v49  ;;  %v1521_v36 = vmin.u32 %v384_v59, %v382_v1  ;;  %v613_v10 = vsel %vm2403_vm0, 0, %v611_v0 }
 0x126   : > { %v608_v33 = vxor.u32 2147483648, %v607_v5  ;;  %v712_v49 = vsel %vm629_vm15, %v711_v20, %v710_v39  ;;  %vm513_vm6 = vweird.f32 %v2167_v6  ;;  %v716_v61 = vsel %vm2423_vm2, 0, %v714_v37 }
 0x127   : > { %v496_v4 = vor.u32 %v495_v54, %v494_v52  ;;  %v499_v13 = vshll.u32 %v498_v55, 23  ;;  %v386_v26 = vclz %v1521_v36  ;;  %v510_v52 = vsel %vm2390_vm14, 0, %v508_v58 }
 0x128   : > { %v609_v29 = vsel %vm526_vm13, %v608_v33, %v607_v5  ;;  %v715_v27 = vsel %vm2423_vm2, %v2162_v63, %v712_v49  ;;  %v405_v54 = vsel %vm320_vm1, %v404_v50, %v2373_v45  ;;  %v927_v59 = vadd.s32 3, %v510_v52 }
 0x129   : > { %v500_v18 = vor.u32 4788187, %v499_v13  ;;  %v503_v9 = vcvt.s32.f32 %v496_v4  ;;  %v1522_v16 = vadd.s32 4294967294, %v386_v26  ;;  %v612_v48 = vsel %vm2403_vm0, %v2155_v56, %v609_v29 }
 0x12a   : > { %v407_v60 = vsel %vm319_vm3, 0, %v405_v54  ;;  %v1031_v4 = vadd.s32 3, %v613_v10  ;;  %v514_v36 = vand.u32 3, %v510_v52  ;;  %v928_v17 = vand.u32 3, %v927_v59 }
 0x12b   : > { %v501_v3 = vand.u32 2147483647, %v500_v18  ;;  %vm1523_vm11 = vcmp.lt.s32.totalorder %v1522_v16, 0  ;;  %v823_v53 = vadd.s32 3, %v407_v60  ;;  %v411_v18 = vand.u32 3, %v407_v60  ;;  %v1298_v60 = vld [vmem:[#allocation5] sm:$0xff] }
 0x12c   : > { %v389_v34 = vsel %vm1523_vm11, 0, %v1522_v16  ;;  %v1032_v26 = vand.u32 3, %v1031_v4  ;;  %vm516_vm4 = vcmp.eq.s32.totalorder %v514_v36, 0  ;;  %vm929_vm7 = vcmp.lt.s32.totalorder %v928_v17, 2 }
 0x12d   : > { %v504_v14 = vmul.f32 %v503_v9, %v501_v3  ;;  %v390_v38 = vsub.s32 32, %v389_v34  ;;  %v394_v30 = vsub.s32 4294967266, %v389_v34  ;;  %v391_v41 = vshll.u32 %v382_v1, %v389_v34 }
 0x12e   : > { %v824_v9 = vand.u32 3, %v823_v53  ;;  %vm515_vm8 = vcmp.lt.s32.totalorder %v514_v36, 2  ;;  %vm519_vm9 = vcmp.eq.s32.totalorder %v514_v36, 2  ;;  %vm930_vm10 = vcmp.eq.s32.totalorder %v928_v17, 0  ;;  %v1301_v36 = vld [vmem:[#allocation5 + $0x18] sm:$0xff]  ;;  %v1302_v53 = vld [vmem:[#allocation5 + $0x20] sm:$0xff] }
 0x12f   : > { %v505_v15 = vxor.u32 2147483648, %v504_v14  ;;  %v392_v42 = vshrl.u32 %v374_v35, %v390_v38  ;;  %v395_v21 = vadd.s32 127, %v394_v30  ;;  %vm933_vm11 = vcmp.eq.s32.totalorder %v928_v17, 2  ;;  %v1303_v17 = vld [vmem:[#allocation5 + $0x28] sm:$0xff] }
 0x130   : > { %v617_v5 = vand.u32 3, %v613_v10  ;;  %vm1034_vm13 = vcmp.eq.s32.totalorder %v1032_v26, 0  ;;  %vm413_vm15 = vcmp.eq.s32.totalorder %v411_v18, 0  ;;  %v1135_v35 = vadd.s32 3, %v716_v61 }
 0x131   : > { %v506_v40 = vsel %vm423_vm12, %v505_v15, %v504_v14  ;;  %v393_v62 = vor.u32 %v392_v42, %v391_v41  ;;  %v396_v43 = vshll.u32 %v395_v21, 23  ;;  %vm412_vm12 = vcmp.lt.s32.totalorder %v411_v18, 2 }
 0x132   : > { %v509_v11 = vsel %vm2390_vm14, %v2167_v6, %v506_v40  ;;  %vm1037_vm14 = vcmp.eq.s32.totalorder %v1032_v26, 2  ;;  %vm825_vm0 = vcmp.lt.s32.totalorder %v824_v9, 2  ;;  %vm416_vm2 = vcmp.eq.s32.totalorder %v411_v18, 2 }
 0x133   : > { %v397_v47 = vor.u32 4788187, %v396_v43  ;;  %v400_v25 = vcvt.s32.f32 %v393_v62  ;;  %1819 = vcosq.f32 %v509_v11  ;;  %v1136_v46 = vand.u32 3, %v1135_v35 }
 0x134   : > { %1821 = vsinq.f32 %v509_v11  ;;  %v1698_v4 = vpack.c.bf16 %v1299_v2, %v1298_v60  ;;  %v1706_v37 = vpack.c.bf16 %v1303_v17, %v1302_v53 }
 0x135   : > { %v398_v8 = vand.u32 2147483647, %v397_v47  ;;  %1823 = vsinq.f32 %v612_v48 }
 0x136   : > { %1825 = vcosq.f32 %v612_v48  ;;  %1699 = vmatprep.subr.bf16.mxu1 %v1698_v4 }
 0x137   : > { %v401_v7 = vmul.f32 %v400_v25, %v398_v8  ;;  %1827 = vcosq.f32 %v715_v27  ;;  %1701 = vmatpush3.bf16.msra.mxu1 %v1698_v4 }
 0x139   : > { %v402_v51 = vxor.u32 2147483648, %v401_v7 }
 0x13b   : > { %v403_v44 = vsel %vm320_vm1, %v402_v51, %v401_v7  ;;  %vm826_vm1 = vcmp.eq.s32.totalorder %v824_v9, 0  ;;  %v720_v7 = vand.u32 3, %v716_v61 }
 0x13c   : > { %v406_v55 = vsel %vm319_vm3, %v2157_v57, %v403_v44  ;;  %vm829_vm3 = vcmp.eq.s32.totalorder %v824_v9, 2  ;;  %v1309_v9 = vld [vmem:[#allocation5 + $0x58] sm:$0xff] }
 0x13d   : > { %1829 = vcosq.f32 %v406_v55  ;;  %v1820_v13 = vpop.eup %1819 }
 0x13e   : > { %1831 = vsinq.f32 %v406_v55  ;;  %v1822_v45 = vpop.eup %1821  ;;  %v520_v3 = vxor.u32 2147483648, %v1820_v13 }
 0x13f   : > { %1833 = vsinq.f32 %v715_v27  ;;  %v2442_v24 = vpop.eup %1823  ;;  %v517_v19 = vxor.u32 2147483648, %v1822_v45 }
 0x140   : > { %v2444_v28 = vpop.eup %1825  ;;  %v620_v16 = vxor.u32 2147483648, %v2442_v24  ;;  %v935_v34 = vsel %vm933_vm11, %v520_v3, %v1822_v45  ;;  %v521_v40 = vsel %vm519_vm9, %v520_v3, %v1822_v45  ;;  %vm622_vm9 = vcmp.eq.s32.totalorder %v617_v5, 2  ;;  %v1308_v3 = vld [vmem:[#allocation5 + $0x50] sm:$0xff] }
 0x141   : > { %v2451_v31 = vpop.eup %1827  ;;  %v623_v14 = vxor.u32 2147483648, %v2444_v28  ;;  %v932_v15 = vsel %vm930_vm10, %v1820_v13, %v517_v19  ;;  %v518_v43 = vsel %vm516_vm4, %v1820_v13, %v517_v19  ;;  %vm1033_vm4 = vcmp.lt.s32.totalorder %v1032_v26, 2  ;;  %v1300_v13 = vld [vmem:[#allocation5 + $0x10] sm:$0xff]  ;;  %v1306_v26 = vld [vmem:[#allocation5 + $0x40] sm:$0xff] }
 0x142   : > { %v1036_v41 = vsel %vm1034_vm13, %v2444_v28, %v620_v16  ;;  %v936_v62 = vsel %vm929_vm7, %v932_v15, %v935_v34  ;;  %v726_v23 = vxor.u32 2147483648, %v2451_v31  ;;  %v522_v49 = vsel %vm515_vm8, %v518_v43, %v521_v40 }
 0x143   : > { %v1039_v20 = vsel %vm1037_vm14, %v623_v14, %v2442_v24  ;;  %v937_v48 = vsel %vm513_vm6, nan, %v936_v62  ;;  %vm619_vm7 = vcmp.eq.s32.totalorder %v617_v5, 0  ;;  %v523_v0 = vsel %vm513_vm6, nan, %v522_v49 }
 0x144   : > { %v1040_v50 = vsel %vm1033_vm4, %v1036_v41, %v1039_v20  ;;  %v621_v58 = vsel %vm619_vm7, %v2444_v28, %v620_v16  ;;  %v624_v57 = vsel %vm622_vm9, %v623_v14, %v2442_v24  ;;  %vm1141_vm10 = vcmp.eq.s32.totalorder %v1136_v46, 2  ;;  %v1305_v24 = vld [vmem:[#allocation5 + $0x38] sm:$0xff]  ;;  %v1307_v28 = vld [vmem:[#allocation5 + $0x48] sm:$0xff]  ;;  %v1310_v16 = vld [vmem:[#allocation5 + $0x60] sm:$0xff] }
 0x145   : > { %vm616_vm11 = vweird.f32 %v2155_v56  ;;  %vm618_vm8 = vcmp.lt.s32.totalorder %v617_v5, 2  ;;  %vm722_vm13 = vcmp.eq.s32.totalorder %v720_v7, 0  ;;  %vm725_vm14 = vcmp.eq.s32.totalorder %v720_v7, 2  ;;  %v1311_v5 = vld [vmem:[#allocation5 + $0x68] sm:$0xff]  ;;  %v1312_v14 = vld [vmem:[#allocation5 + $0x70] sm:$0xff] }
 0x146   : > { %v1041_v52 = vsel %vm616_vm11, nan, %v1040_v50  ;;  %v625_v27 = vsel %vm618_vm8, %v621_v58, %v624_v57  ;;  %vm719_vm6 = vweird.f32 %v2162_v63  ;;  %v1702_v45 = vpack.c.bf16 %v1301_v36, %v1300_v13  ;;  %v1304_v63 = vld [vmem:[#allocation5 + $0x30] sm:$0xff] }
 0x147   : > { %v1830_v32 = vpop.eup %1829  ;;  %v626_v10 = vsel %vm616_vm11, nan, %v625_v27  ;;  %v1710_v18 = vpack.c.bf16 %v1305_v24, %v1304_v63  ;;  %v1714_v19 = vpack.c.bf16 %v1307_v28, %v1306_v26  ;;  %v1718_v61 = vpack.c.bf16 %v1309_v9, %v1308_v3 }
 0x148   : > { %v1832_v38 = vpop.eup %1831  ;;  %v417_v30 = vxor.u32 2147483648, %v1830_v32  ;;  %1703 = vmatprep.subr.bf16.mxu1 %v1702_v45 }
 0x149   : > { %v1834_v33 = vpop.eup %1833  ;;  %v414_v39 = vxor.u32 2147483648, %v1832_v38  ;;  %1705 = vmatpush3.bf16.msra.mxu1 %v1702_v45 }
 0x14a   : > { %v831_v42 = vsel %vm829_vm3, %v417_v30, %v1832_v38  ;;  %v418_v21 = vsel %vm416_vm2, %v417_v30, %v1832_v38  ;;  %v723_v12 = vxor.u32 2147483648, %v1834_v33  ;;  %v1143_v51 = vsel %vm1141_vm10, %v726_v23, %v1834_v33  ;;  %1707 = vmatprep.subr.bf16.mxu1 %v1706_v37  ;;  %v1552_v38 = vld [vmem:[%s2539_s3] ss:$0 sm:$0xff] }
 0x14b   : > { %v828_v22 = vsel %vm826_vm1, %v1830_v32, %v414_v39  ;;  %v415_v29 = vsel %vm413_vm15, %v1830_v32, %v414_v39  ;;  %v727_v44 = vsel %vm725_vm14, %v726_v23, %v1834_v33  ;;  %vm721_vm15 = vcmp.lt.s32.totalorder %v720_v7, 2  ;;  %v1313_v32 = vld [vmem:[#allocation5 + $0x78] sm:$0xff] }
 0x14c   : > { %v832_v11 = vsel %vm825_vm0, %v828_v22, %v831_v42  ;;  %v419_v47 = vsel %vm412_vm12, %v415_v29, %v418_v21  ;;  %vm1137_vm12 = vcmp.lt.s32.totalorder %v1136_v46, 2  ;;  %v724_v6 = vsel %vm722_vm13, %v2451_v31, %v723_v12 }
 0x14d   : > { %v833_v8 = vsel %vm410_vm5, nan, %v832_v11  ;;  %v420_v25 = vsel %vm410_vm5, nan, %v419_v47  ;;  %vm1138_vm5 = vcmp.eq.s32.totalorder %v1136_v46, 0  ;;  %v728_v55 = vsel %vm721_vm15, %v724_v6, %v727_v44  ;;  %1709 = vmatpush3.bf16.msra.mxu1 %v1706_v37 }
 0x14e   : > { %1249 = vmatprep.mubr.f32.mxu0 %v833_v8  ;;  %v1140_v1 = vsel %vm1138_vm5, %v2451_v31, %v723_v12  ;;  %v729_v59 = vsel %vm719_vm6, nan, %v728_v55  ;;  %1711 = vmatprep.subr.bf16.mxu1 %v1710_v18  ;;  %v1722_v31 = vpack.c.bf16 %v1311_v5, %v1310_v16  ;;  %v1726_v15 = vpack.c.bf16 %v1313_v32, %v1312_v14 }
 0x14f   : > { %1250 = vmatmul.mubr.f32.vlgmr.msra.gmra.mrb[0].mxu0 %v420_v25  ;;  %v1144_v54 = vsel %vm1137_vm12, %v1140_v1, %v1143_v51 }
 0x150   : > { %1254 = vmatprep.mubr.f32.mxu0 %v937_v48  ;;  %v1145_v56 = vsel %vm719_vm6, nan, %v1144_v54 }
 0x151   : > { %1713 = vmatpush3.bf16.msra.mxu1 %v1710_v18 }
 0x152   : > { %1715 = vmatprep.subr.bf16.mxu1 %v1714_v19 }
 0x153   : > { %1255 = vmatmul.mubr.f32.gmra.mrb[2].mxu0 %v523_v0 }
 0x154   : > { %1259 = vmatprep.mubr.f32.mxu0 %v1041_v52 }
 0x155   : > { %1717 = vmatpush3.bf16.msra.mxu1 %v1714_v19 }
 0x156   : > { %1719 = vmatprep.subr.bf16.mxu1 %v1718_v61 }
 0x157   : > { %1260 = vmatmul.mubr.f32.gmra.mrb[4].mxu0 %v626_v10 }
 0x158   : > { %1264 = vmatprep.mubr.f32.mxu0 %v1145_v56  ;;  %v1557_v56 = vld [vmem:[%s2541_s5] ss:$0 sm:$0xff] }
 0x159   : > { %1721 = vmatpush3.bf16.msra.mxu1 %v1718_v61 }
 0x15a   : > { %1723 = vmatprep.subr.bf16.mxu1 %v1722_v31 }
 0x15b   : > { %1265 = vmatmul.mubr.f32.gmra.mrb[6].mxu0 %v729_v59 }
 0x15d   : > { %1725 = vmatpush3.bf16.msra.mxu1 %v1722_v31 }
 0x15e   : > { %1727 = vmatprep.subr.bf16.mxu1 %v1726_v15 }
 0x161   : > { %1729 = vmatpush3.bf16.msra.mxu1 %v1726_v15 }
 0x222   : > { %v1596_v34 = vpop.f32.mrb[0].mxu0 }
 0x223   : > { %v1597_v35 = vpop.f32.mrb[1].mxu0 }
 0x224   : > { %v1598_v30 = vadd.f32 %v1597_v35, %v1596_v34 }
 0x226   : > { %v1599_v33 = vpop.f32.mrb[2].mxu0  ;;  %v1252_v39 = vadd.f32 %v1598_v30, %v1552_v38 }
 0x227   : > { %v1600_v40 = vpop.f32.mrb[3].mxu0 }
 0x228   : > { %v1601_v41 = vadd.f32 %v1600_v40, %v1599_v33  ;;  %v1553_v42 = vmul.f32 -1.442695, %v1252_v39 }
 0x22a   : > { %v1257_v21 = vadd.f32 %v1601_v41, %v1552_v38  ;;  %v1602_v62 = vpop.f32.mrb[4].mxu0  ;;  %1835 = vpow2.f32 %v1553_v42 }
 0x22b   : > { %v1603_v43 = vpop.f32.mrb[5].mxu0 }
 0x22c   : > { %v1554_v22 = vmul.f32 -1.442695, %v1257_v21  ;;  %v1604_v29 = vadd.f32 %v1603_v43, %v1602_v62 }
 0x22e   : > { %1837 = vpow2.f32 %v1554_v22  ;;  %v1262_v20 = vadd.f32 %v1604_v29, %v1552_v38  ;;  %v1605_v46 = vpop.f32.mrb[6].mxu0 }
 0x22f   : > { %v1606_v11 = vpop.f32.mrb[7].mxu0 }
 0x230   : > { %v1555_v47 = vmul.f32 -1.442695, %v1262_v20  ;;  %v1607_v12 = vadd.f32 %v1606_v11, %v1605_v46 }
 0x232   : > { %1839 = vpow2.f32 %v1555_v47  ;;  %v1267_v23 = vadd.f32 %v1607_v12, %v1552_v38 }
 0x234   : > { %v1836_v8 = vpop.eup %1835  ;;  %v1556_v25 = vmul.f32 -1.442695, %v1267_v23 }
 0x235   : > { %v1282_v48 = vadd.f32 1.0, %v1836_v8 }
 0x236   : > { %1841 = vpow2.f32 %v1556_v25 }
 0x237   : > { %1843 = vrcp.f32 %v1282_v48 }
 0x238   : > { %v1838_v49 = vpop.eup %1837 }
 0x239   : > { %v1283_v50 = vadd.f32 1.0, %v1838_v49 }
 0x23b   : > { %1845 = vrcp.f32 %v1283_v50 }
 0x23c   : > { %v1840_v58 = vpop.eup %1839 }
 0x23d   : > { %v1284_v7 = vadd.f32 1.0, %v1840_v58 }
 0x23f   : > { %1847 = vrcp.f32 %v1284_v7 }
 0x240   : > { %v1842_v0 = vpop.eup %1841 }
 0x241   : > { %v1844_v57 = vpop.eup %1843  ;;  %v1285_v1 = vadd.f32 1.0, %v1842_v0 }
 0x242   : > { %v1294_v51 = vmul.f32 %v1844_v57, %v1252_v39 }
 0x243   : > { %1849 = vrcp.f32 %v1285_v1 }
 0x244   : > { %1660 = vmatprep.mubr.f32.mxu1 %v1294_v51 }
 0x245   : > { %v1846_v52 = vpop.eup %1845 }
 0x246   : > { %v1295_v27 = vmul.f32 %v1846_v52, %v1257_v21 }
 0x248   : > { %1661 = vmatmul.mubr.f32.vlgmr.msra.gmra.mrb[0].mxu1 %v1295_v27 }
 0x249   : > { %v1848_v54 = vpop.eup %1847 }
 0x24a   : > { %v1296_v6 = vmul.f32 %v1848_v54, %v1262_v20 }
 0x24c   : > { %1663 = vmatprep.mubr.f32.mxu1 %v1296_v6 }
 0x24d   : > { %v1850_v44 = vpop.eup %1849 }
 0x24e   : > { %v1297_v10 = vmul.f32 %v1850_v44, %v1267_v23 }
 0x250   : > { %1664 = vmatmul.mubr.f32.gmra.mrb[2].mxu1 %v1297_v10 }
 0x31b   : > { %v1662_v55 = vpop.f32.mrb[0].mxu1 }
 0x31c   : > { %v1393_v59 = vadd.f32 %v1662_v55, %v1557_v56  ;;  %v1387_v60 = vpop.f32.mrb[1].mxu1 }
 0x31d   : > { %v1388_v2 = vadd.f32 %v1557_v56, %v1387_v60 }
 0x31e   : > { %1407 = vst [vmem:[%s275_s13 + $0x8] sm:$0xff] %v1393_v59 }
 0x31f   : > { %1406 = vst [vmem:[%s275_s13] sm:$0xff] %v1388_v2 }
 0x323   : > { %v1665_v4 = vpop.f32.mrb[2].mxu1 }
 0x324   : > { %v1403_v13 = vadd.f32 %v1665_v4, %v1557_v56  ;;  %v1397_v36 = vpop.f32.mrb[3].mxu1 }
 0x325   : > { %v1398_v45 = vadd.f32 %v1557_v56, %v1397_v36 }
 0x326   : > { %1409 = vst [vmem:[%s275_s13 + $0x18] sm:$0xff] %v1403_v13 }
 0x327   : > { %1408 = vst [vmem:[%s275_s13 + $0x10] sm:$0xff] %v1398_v45 }
 0x328   : > { %1920 = shalt.err (!%p1917_p11)
}
 0x329   : > { %s1921_s19 = scalar_lea.hbm %s2493_s29, 512  ;;  %s1925_s28 = scalar_lea.hbm %s2542_s6, 1024 }
 0x32a   : > { %p1922_p13 = scmp.ne.s32.totalorder %s2493_s29, %s1921_s19  ;;  %p1926_p6 = scmp.lt.u32.totalorder %s2493_s29, %s2542_s6 }
 0x32b   : > { %p1927_p9 = scmp.lt.u32.totalorder %s1925_s28, %s1921_s19  ;;  %p1929_p10 = scmp.lt.u32.totalorder %s1921_s19, %s2493_s29 }
 0x32c   : > { %p1923_p5 = pnand %p1922_p13, %p2561_p1 }
 0x32d   : > { %p1928_p12 = por %p1927_p9, %p1926_p6 }
 0x32e   : > { %p1924_p0 = pneg %p1923_p5 }
 0x32f   : > { %p1930_p2 = por %p1929_p10, %p1928_p12 }
 0x331   : > { %p1931_p3 = pnand %p1930_p2, %p1924_p0 }
 0x333   : > { %1934 = shalt.err (!%p1931_p3)
}
 0x334   : > { %s1991_s12 = smov 128   ;;  %s1992_s9 = smov 8  }
 0x335   : > { %1754 = dma.vmem_to_hbm [thread:$0]  (%p2561_p1), %s2488_s15, 512, %s2493_s29, %s2495_s10, %s1991_s12, %s1991_s12, %s1992_s9  }
 0x336 PF: > { %p1771_p4 = scmp.ge.s32.totalorder %s1977_s24, 2  ;;  %s1439_s14 = sand.u32 1, %s1965_s21  }
 0x337   : > { %p2562_p7 = scmp.ne.s32.totalorder %s2547_s8, 0  ;;  %s1440_s16 = scalar_lea.sflag [#allocation4], %s1439_s14 }
 0x339   : > { %p1764_p8 = pnand %p1771_p4, %p2562_p7 }
 0x33b   : > { %1960 = dma.done.wait (!%p1764_p8), %s1440_s16, 512  }
 0x33c   : > { %1962 = vsyncadd (!%p1764_p8), %s1440_s16, 4294966784  ;;  %p18_p11 = scmp.ge.s32.totalorder %s2053_s27, 4   ;;  %s2563_s21 = smov %s1969_s22 }
 0x33d   : > { %s2564_s22 = smov %s1973_s23  ;;  %s2565_s23 = smov %s2064_s30 }
 0x33e   : > { %s2566_s24 = smov %s2053_s27  ;;  %20 = sbr.rel (!%p18_p11) target bundleno = 5 (0x5), region = 88 }
 0x345   :  { %1445 = vsyncpa [#allocation3], 1 }
 0x346   :  { %1447 = vsyncpa [#allocation3 + $0x1], 1 }
 0x347   :  { %1448 = vsyncpa [#allocation6], 1 }
 0x348   :  { %1449 = vsyncpa [#allocation4], 1 }
 0x349   :  { %1451 = vsyncpa [#allocation4 + $0x1], 1 }

</bundles_post_ra>
